<compile_context>
chip_gen: v7x
topology: tpu7x:2x2x1
jax: 0.10.0
libtpu: 0.0.40
codegen_flags: <defaults>
</compile_context>

<pallas_src>
import functools

import jax
import jax.numpy as jnp
from jax.experimental import pallas as pl
from jax.experimental.pallas import tpu as pltpu

LANES = 128
SUBLANES = 8
MAX_BLOCK_ROWS = 4096                 # 4096 * 128 * 4B = 2 MiB per f32 input tile
VMEM_LIMIT_BYTES = 32 * 1024 * 1024   # explicit scoped-VMEM budget (all gens)


def _mse_partial_kernel(n_ref, x_ref, t_ref, out_ref, *, apply_mask):
    """Accumulate per-lane partial sums of (x - t)^2 into the (8, 128) out block."""
    c = pl.program_id(0)   # split axis (megacore / multi-TC)
    i = pl.program_id(1)   # reduction axis

    @pl.when(i == 0)
    def _init():
        out_ref[...] = jnp.zeros_like(out_ref)

    x = x_ref[...]
    t = t_ref[...]
    # Upcast only when needed: bf16 stays bf16 through HBM->VMEM (half the bytes
    # on a bandwidth-bound kernel) and is widened in-register (mandatory on v5e,
    # whose VPU has no bf16 path).
    if x.dtype != jnp.float32:
        x = x.astype(jnp.float32)
    if t.dtype != jnp.float32:
        t = t.astype(jnp.float32)
    d = x - t

    if apply_mask:
        # Zero out elements past the true element count: boundary-block garbage
        # rows, clamped (duplicate) blocks and any ragged-tail padding.  Pure VPU
        # work, fully hidden under the HBM-bound DMA stream.
        block_rows = x_ref.shape[0]
        row0 = (c * pl.num_programs(1) + i) * block_rows
        rows = jax.lax.broadcasted_iota(jnp.int32, d.shape, 0) + row0
        lanes = jax.lax.broadcasted_iota(jnp.int32, d.shape, 1)
        elem = rows * LANES + lanes          # int32: fine for numel < 2**31
        d = jnp.where(elem < n_ref[0], d, 0.0)

    dd = d * d
    # VPU-only partial reduce: fold (block_rows, 128) into the resident (8, 128)
    # output accumulator with elementwise vreg adds (no cross-lane XLU work).
    out_ref[...] += jnp.sum(dd.reshape(-1, SUBLANES, LANES), axis=0)


def _round_up(x, m):
    return ((x + m - 1) // m) * m


def _row_align(*dtypes):
    """Row multiple respecting sublane packing: 8 (32-bit), 16 (16-bit), 32 (8-bit)."""
    align = SUBLANES
    for dt in dtypes:
        packing = max(1, 4 // jnp.dtype(dt).itemsize)
        align = max(align, SUBLANES * packing)
    return align


def _flatten_lane_dense(a, row_align):
    """View `a` as a lane-dense (M, 128) slab (free reshape when numel % 128 == 0)."""
    flat = a.reshape(-1)
    n = flat.shape[0]
    if n % LANES == 0:
        return flat.reshape(-1, LANES)     # common path: no HBM copy
    # TODO(synk): numel % 128 != 0 still needs one zero-padded copy to build a
    # lane-dense 2-D view at all (the in-kernel mask makes the pad values moot);
    # rare for conv feature maps.
    rows = _round_up(pl.cdiv(n, LANES), row_align)
    flat = jnp.pad(flat, (0, rows * LANES - n))
    return flat.reshape(rows, LANES)


def content_loss_forward(x, target, *, max_block_rows=MAX_BLOCK_ROWS,
                         core_parallel=False):
    """Returns (input_passthrough, loss), mirroring ContentLoss.forward."""
    n = x.size
    row_align = _row_align(x.dtype, target.dtype)
    x2d = _flatten_lane_dense(x, row_align)
    t2d = _flatten_lane_dense(target, row_align)
    M = x2d.shape[0]

    # Always run with the largest tile; cdiv grid + in-kernel masking handle any M.
    block_rows = min(_round_up(max_block_rows, row_align), _round_up(M, row_align))
    total_steps = pl.cdiv(M, block_rows)

    # 2-way split of the reduction so multi-TensorCore chips can shard it.
    num_splits = 2 if total_steps >= 2 else 1
    steps_per_split = pl.cdiv(total_steps, num_splits)
    covered_rows = num_splits * steps_per_split * block_rows
    needs_mask = covered_rows != M

    last_block = total_steps - 1
    if num_splits * steps_per_split == total_steps:
        def in_map(c, i, n_ref):
            return (c * steps_per_split + i, 0)
    else:
        # Odd step count: clamp the overhanging step onto the last block; its
        # contribution is fully masked out in-kernel (indices come from program
        # ids, not from the clamped data).
        def in_map(c, i, n_ref):
            return (jnp.minimum(c * steps_per_split + i, last_block), 0)

    if core_parallel and num_splits == 2:
        # v7x: land the 2-way split explicitly on the two TensorCores.
        dims = (pltpu.CORE_PARALLEL, pltpu.ARBITRARY)
    else:
        # "parallel" is the standard megacore sharding hint; harmless on 1-TC chips.
        dims = ("parallel", "arbitrary")

    partials = pl.pallas_call(
        functools.partial(_mse_partial_kernel, apply_mask=needs_mask),
        out_shape=jax.ShapeDtypeStruct((num_splits * SUBLANES, LANES), jnp.float32),
        grid_spec=pltpu.PrefetchScalarGridSpec(
            num_scalar_prefetch=1,                     # element count, for masking
            grid=(num_splits, steps_per_split),
            in_specs=[
                pl.BlockSpec((block_rows, LANES), in_map),
                pl.BlockSpec((block_rows, LANES), in_map),
            ],
            out_specs=pl.BlockSpec((SUBLANES, LANES), lambda c, i, n_ref: (c, 0)),
        ),
        compiler_params=pltpu.CompilerParams(
            dimension_semantics=dims,
            vmem_limit_bytes=VMEM_LIMIT_BYTES,
        ),
    )(jnp.array([n], dtype=jnp.int32), x2d, t2d)

    # Tiny final cross-lane reduce + mean: one fused XLA op over <= 2048 floats.
    loss = jnp.sum(partials) / jnp.float32(n)
    # ContentLoss returns its input unchanged; the loss is the side value.
    return x, loss


if __name__ == "__main__":
    key = jax.random.PRNGKey(0)
    ks = jax.random.split(key, 8)

    def check(xa, ta, rtol=1e-4):
        out, loss = content_loss_forward(xa, ta)
        jax.block_until_ready(loss)
        ref = jnp.mean((xa - ta) ** 2)
        assert jnp.allclose(loss, ref, rtol=rtol, atol=1e-6), (loss, ref)
        assert out is xa  # identity pass-through

    # 1) Typical conv feature map (B=2, C=4, 16x16): numel % 1024 == 0, single block.
    check(jax.random.normal(ks[0], (2, 4, 16, 16), jnp.float32),
          jax.random.normal(ks[1], (2, 4, 16, 16), jnp.float32))

    # 2) Ragged numel (not a multiple of 128): padded lane-dense view.
    check(jax.random.normal(ks[2], (2, 3, 7, 5), jnp.float32),
          jax.random.normal(ks[3], (2, 3, 7, 5), jnp.float32))

    # 3) numel % 128 == 0 but rows not a multiple of 8: boundary-block masking path.
    check(jax.random.normal(ks[4], (1, 3, 8, 16), jnp.float32),
          jax.random.normal(ks[5], (1, 3, 8, 16), jnp.float32))

    # 4) Multi-block: 2-way split, partial last block, odd step count (clamped map).
    check(jax.random.normal(ks[6], (10, 4, 205, 128), jnp.float32),
          jax.random.normal(ks[7], (10, 4, 205, 128), jnp.float32))

    print("KERNEL_OK")
</pallas_src>

<mosaic_0001>
module attributes {stable_mosaic.version = 11 : i64} {
  func.func @_mse_partial_kernel(%arg0: i32, %arg1: i32, %arg2: memref<1xi32, #tpu.memory_space<smem>>, %arg3: memref<16x128xf32, #tpu.memory_space<vmem>>, %arg4: memref<16x128xf32, #tpu.memory_space<vmem>>, %arg5: memref<8x128xf32, #tpu.memory_space<vmem>>) attributes {dimension_semantics = [#tpu.dimension_semantics<parallel>, #tpu.dimension_semantics<arbitrary>], iteration_bounds = array<i64: 1, 1>, scalar_prefetch = 1 : i64, scratch_operands = 0 : i64, tpu.core_type = #tpu.core_type<tc>, window_params = [{transform_indices = @transform_0, window_bounds = array<i64: 16, 128>}, {transform_indices = @transform_1, window_bounds = array<i64: 16, 128>}, {transform_indices = @transform_2, window_bounds = array<i64: 8, 128>}]} {
    %c0_i32 = arith.constant 0 : i32
    %0 = arith.cmpi eq, %arg1, %c0_i32 : i32
    %1 = arith.extui %0 : i1 to i32
    %c0_i32_0 = arith.constant 0 : i32
    %2 = arith.cmpi ne, %1, %c0_i32_0 : i32
    scf.if %2 {
      %cst_8 = arith.constant 0.000000e+00 : f32
      %12 = vector.broadcast %cst_8 : f32 to vector<8x128xf32>
      %c0_9 = arith.constant 0 : index
      %c0_10 = arith.constant 0 : index
      %13 = vector.load %arg5[%c0_9, %c0_10] : memref<8x128xf32, #tpu.memory_space<vmem>>, vector<8x128xf32>
      tpu.vector_store %arg5[%c0_9, %c0_10], %12 {strides = array<i32>} : memref<8x128xf32, #tpu.memory_space<vmem>>, vector<8x128xf32>,
    } else {
    }
    %c0 = arith.constant 0 : index
    %c0_1 = arith.constant 0 : index
    %3 = vector.load %arg3[%c0, %c0_1] : memref<16x128xf32, #tpu.memory_space<vmem>>, vector<16x128xf32>
    %c0_2 = arith.constant 0 : index
    %c0_3 = arith.constant 0 : index
    %4 = vector.load %arg4[%c0_2, %c0_3] : memref<16x128xf32, #tpu.memory_space<vmem>>, vector<16x128xf32>
    %5 = arith.subf %3, %4 : vector<16x128xf32>
    %6 = arith.mulf %5, %5 : vector<16x128xf32>
    %c0_4 = arith.constant 0 : index
    %c0_5 = arith.constant 0 : index
    %7 = vector.load %arg5[%c0_4, %c0_5] : memref<8x128xf32, #tpu.memory_space<vmem>>, vector<8x128xf32>
    %8 = vector.shape_cast %6 : vector<16x128xf32> to vector<2x8x128xf32>
    %cst = arith.constant dense<0.000000e+00> : vector<8x128xf32>
    %9 = vector.multi_reduction <add>, %8, %cst [0] : vector<2x8x128xf32> to vector<8x128xf32>
    %10 = arith.addf %7, %9 : vector<8x128xf32>
    %c0_6 = arith.constant 0 : index
    %c0_7 = arith.constant 0 : index
    %11 = vector.load %arg5[%c0_6, %c0_7] : memref<8x128xf32, #tpu.memory_space<vmem>>, vector<8x128xf32>
    tpu.vector_store %arg5[%c0_6, %c0_7], %10 {strides = array<i32>} : memref<8x128xf32, #tpu.memory_space<vmem>>, vector<8x128xf32>,
    return
  }
  func.func @transform_0(%arg0: i32, %arg1: i32, %arg2: memref<1xi32, #tpu.memory_space<smem>>) -> (i32, i32) {
    %c1_i32 = arith.constant 1 : i32
    %0 = arith.muli %arg0, %c1_i32 : i32
    %1 = arith.addi %0, %arg1 : i32
    %c0_i32 = arith.constant 0 : i32
    %c0_i32_0 = arith.constant 0 : i32
    return %1, %c0_i32 : i32, i32
  }
  func.func @transform_1(%arg0: i32, %arg1: i32, %arg2: memref<1xi32, #tpu.memory_space<smem>>) -> (i32, i32) {
    %c1_i32 = arith.constant 1 : i32
    %0 = arith.muli %arg0, %c1_i32 : i32
    %1 = arith.addi %0, %arg1 : i32
    %c0_i32 = arith.constant 0 : i32
    %c0_i32_0 = arith.constant 0 : i32
    return %1, %c0_i32 : i32, i32
  }
  func.func @transform_2(%arg0: i32, %arg1: i32, %arg2: memref<1xi32, #tpu.memory_space<smem>>) -> (i32, i32) {
    %c0_i32 = arith.constant 0 : i32
    %c0_i32_0 = arith.constant 0 : i32
    return %arg0, %c0_i32 : i32, i32
  }
}

</mosaic_0001>

<bundles_post_ra>
// kernel: tpu_custom_call.1
= control target key start
LH: loop header
LB: loop body
LE: loop exit
PB: predicated region body
PF: predicated region fallthrough
CT: control target
= control target key end

     0   :  { %9 = vsyncpa [#allocation5], 0  ;;  %s226_s0 = inlined_call_operand.<no memory space> [shape: s32[1], index: 0, kind: input, shape index: {}]   ;;  %s227_s1 = inlined_call_operand.hbm [shape: f32[16,128], index: 1, kind: input, shape index: {}]   ;;  %s228_s2 = inlined_call_operand.hbm [shape: f32[16,128], index: 2, kind: input, shape index: {}]   ;;  %s229_s3 = inlined_call_operand.hbm [shape: f32[8,128], index: 3, kind: output, shape index: {}]  }
   0x1   :  { %10 = vsyncpa [#allocation8], 0 }
   0x2   :  { %11 = vsyncpa [#allocation6], 0  ;;  %s165_s12 = smov [#allocation4]   ;;  %s93_s16 = scalar_lea.hbm %s227_s1, 256 }
   0x3   :  { %s21_s13 = sshll.u32 %s165_s12, 4  ;;  %p94_p0 = scmp.ne.s32.totalorder %s227_s1, %s93_s16  ;;  %s22_s13 = int_to_ptr.vmem [resolvable:$true] %s21_s13 }
   0x4   :  { %p97_p1 = scmp.lt.u32.totalorder %s93_s16, %s227_s1 }
   0x6   :  { %p99_p2 = pnand %p97_p1, %p94_p0 }
   0x8   :  { %102 = shalt.err (!%p99_p2)
}
   0x9   :  { %s103_s20 = scalar_lea.vmem %s22_s13, 256  ;;  %p108_p4 = scmp.lt.s32.totalorder %s22_s13, %s22_s13 }
   0xa   :  { %p104_p3 = scmp.ne.s32.totalorder %s22_s13, %s103_s20  ;;  %p109_p5 = scmp.lt.s32.totalorder %s103_s20, %s103_s20 }
   0xc   :  { %p110_p6 = por %p109_p5, %p108_p4 }
   0xe   :  { %p111_p7 = pnand %p110_p6, %p104_p3 }
  0x10   :  { %114 = shalt.err (!%p111_p7)
}
  0x11   :  { %s166_s21 = smov 128   ;;  %s167_s22 = smov 8  }
  0x12   :  { %27 = dma.hbm_to_vmem [thread:$0]  %s227_s1, 256, %s22_s13, [#allocation5], %s166_s21, %s166_s21, %s167_s22  }
  0x13   :  { %s168_s25 = smov [#allocation7]   ;;  %s115_s29 = scalar_lea.hbm %s228_s2, 256 }
  0x14   :  { %s37_s26 = sshll.u32 %s168_s25, 4  ;;  %p116_p8 = scmp.ne.s32.totalorder %s228_s2, %s115_s29  ;;  %s38_s26 = int_to_ptr.vmem [resolvable:$true] %s37_s26 }
  0x15   :  { %p119_p9 = scmp.lt.u32.totalorder %s115_s29, %s228_s2 }
  0x17   :  { %p121_p10 = pnand %p119_p9, %p116_p8 }
  0x19   :  { %124 = shalt.err (!%p121_p10)
}
  0x1a   :  { %s125_s7 = scalar_lea.vmem %s38_s26, 256  ;;  %p130_p12 = scmp.lt.s32.totalorder %s38_s26, %s38_s26 }
  0x1b   :  { %p126_p11 = scmp.ne.s32.totalorder %s38_s26, %s125_s7  ;;  %p131_p13 = scmp.lt.s32.totalorder %s125_s7, %s125_s7 }
  0x1d   :  { %p132_p0 = por %p131_p13, %p130_p12 }
  0x1f   :  { %p133_p1 = pnand %p132_p0, %p126_p11 }
  0x21   :  { %136 = shalt.err (!%p133_p1)
}
  0x22   :  { %43 = dma.hbm_to_vmem [thread:$0]  %s228_s2, 256, %s38_s26, [#allocation8], %s166_s21, %s166_s21, %s167_s22  }
  0x23   :  { %159 = dma.done.wait [#allocation5], 256  }
  0x24   :  { %160 = vsyncadd [#allocation5], 4294967040 }
  0x25   :  { %161 = dma.done.wait [#allocation8], 256  }
  0x26   :  { %162 = vsyncadd [#allocation8], 4294967040  ;;  %v59_v0 = vld [vmem:[#allocation4] sm:$0xff]  ;;  %v60_v1 = vld [vmem:[#allocation4 + $0x8] sm:$0xff]  ;;  %s169_s9 = smov [#allocation9]  }
  0x27   :  { %v61_v2 = vld [vmem:[#allocation7] sm:$0xff]  ;;  %v62_v3 = vld [vmem:[#allocation7 + $0x8] sm:$0xff]  ;;  %s77_s10 = sshll.u32 %s169_s9, 4  ;;  %s78_s10 = int_to_ptr.vmem [resolvable:$true] %s77_s10 }
  0x28   :  { %v63_v4 = vsub.f32 %v59_v0, %v61_v2  ;;  %v64_v5 = vsub.f32 %v60_v1, %v62_v3  ;;  %s137_s11 = scalar_lea.vmem %s78_s10, 128  ;;  %p142_p3 = scmp.lt.s32.totalorder %s78_s10, %s78_s10 }
  0x29   :  { %p138_p2 = scmp.ne.s32.totalorder %s78_s10, %s137_s11  ;;  %p143_p4 = scmp.lt.s32.totalorder %s137_s11, %s137_s11 }
  0x2a   :  { %v65_v6 = vmul.f32 %v63_v4, %v63_v4  ;;  %v66_v7 = vmul.f32 %v64_v5, %v64_v5 }
  0x2b   :  { %p144_p5 = por %p143_p4, %p142_p3 }
  0x2c   :  { %v68_v8 = vadd.f32 %v66_v7, %v65_v6 }
  0x2d   :  { %p145_p6 = pnand %p144_p5, %p138_p2 }
  0x2e   :  { %70 = vst [vmem:[#allocation9] sm:$0xff] %v68_v8 }
  0x2f   :  { %148 = shalt.err (!%p145_p6)
}
  0x30   :  { %s149_s13 = scalar_lea.hbm %s229_s3, 128 }
  0x31   :  { %p150_p7 = scmp.ne.s32.totalorder %s229_s3, %s149_s13  ;;  %p153_p8 = scmp.lt.u32.totalorder %s149_s13, %s229_s3 }
  0x33   :  { %p155_p9 = pnand %p153_p8, %p150_p7 }
  0x35   :  { %158 = shalt.err (!%p155_p9)
}
  0x36   :  { %80 = dma.vmem_to_hbm [thread:$0]  %s78_s10, 128, %s229_s3, [#allocation6]  }
  0x37   :  { %163 = dma.done.wait [#allocation6], 128  }
  0x38   :  { %164 = vsyncadd [#allocation6], 4294967168 }
  0x39   :  { %84 = vsyncpa [#allocation5], 1 }
  0x3a   :  { %85 = vsyncpa [#allocation8], 1 }
  0x3b   :  { %86 = vsyncpa [#allocation6], 1 }

</bundles_post_ra>
